<compile_context>
chip_gen: v6e
topology: v6e:2x2x1
jax: 0.10.0
libtpu: 0.0.40
codegen_flags: <defaults>
</compile_context>

<pallas_src>
import jax
import jax.numpy as jnp
from jax import lax
from jax.experimental import pallas as pl
from jax.experimental.pallas import tpu as pltpu

_LANE = 128


def _round_up(a, b):
    return pl.cdiv(a, b) * b


def _linear_predict_kernel(x_ref, w_ref, b_ref, o_ref):
    # x_ref: (TILE_N, D) VMEM tile of samples.
    # w_ref: (1, D) f32 coefficient row, resident across grid steps.
    # b_ref: (1, 1) f32 intercept in SMEM.
    # o_ref: (1, TILE_N) lane-dense output slab.
    x = x_ref[...]
    w = w_ref[...]
    if x.dtype != w.dtype:
        # bf16 activations: upcast in-register so the fitted coefficients stay
        # exactly float32 (HBM traffic was already halved by the bf16 load).
        x = x.astype(w.dtype)
    # Contract the feature (lane) dim of both operands -> (1, TILE_N).  This is
    # the same transposed-RHS orientation the MXU handles natively for q @ k^T
    # in flash attention, so no XLU transpose of the big x tile is expected.
    # If a bundle dump ever shows vxpose of x, switch to x @ coef_col and
    # relayout only the tiny (TILE_N, 1) result column instead.
    y = lax.dot_general(
        w,
        x,
        dimension_numbers=(((1,), (1,)), ((), ())),
        preferred_element_type=jnp.float32,
    )
    o_ref[...] = (y + b_ref[0, 0]).astype(o_ref.dtype)


def sklearn_model_forward(x, coef, intercept):
    """Pallas equivalent of SklearnModel.forward for a linear sklearn model.

    x:         (N, D) float32 or bfloat16 (bf16 only if the producer already
               emits bf16 -- do NOT cast in the wrapper just to save bandwidth)
    coef:      (D,)   float   (sklearn_model.coef_)
    intercept: scalar float   (sklearn_model.intercept_)
    returns:   (N, 1) float32
    """
    n, d = x.shape

    if x.dtype not in (jnp.bfloat16, jnp.float32):
        x = x.astype(jnp.float32)
    itemsize = jnp.dtype(x.dtype).itemsize

    w = coef.reshape(1, d).astype(jnp.float32)                # (1, D) f32 row
    b = jnp.asarray(intercept, jnp.float32).reshape(1, 1)     # scalar -> SMEM

    # ---- D-aware, 128-aligned tile sizing --------------------------------
    d_pad = _round_up(d, _LANE)            # lane-padded VMEM width of one row
    row_bytes = d_pad * itemsize
    target_block_bytes = 2 << 20           # ~2 MiB x block: near HBM roofline
    budget_block_bytes = 8 << 20           # 2 buffers -> <=16 MiB (v7x-safe)
    rows_target = max(
        (min(target_block_bytes, budget_block_bytes) // row_bytes) // _LANE * _LANE,
        _LANE,
    )

    if n <= 2 * _LANE:
        # Single full-array block: block dims equal the array dims, so the
        # (8,128) divisibility rule is trivially satisfied and nothing is
        # padded or partially read.
        tile_n = n
    else:
        # At least two grid steps (both v7x TensorCores get work under
        # "parallel" semantics), never larger than the DMA target, always a
        # multiple of 128 so the output slab stays lane-dense.
        tile_n = min(rows_target, _round_up(pl.cdiv(n, 2), _LANE))
    num_tiles = pl.cdiv(n, tile_n)
    out_total = num_tiles * tile_n         # lane-dense output width

    # TODO(synk): non-linear sklearn estimators (trees, SVMs, ...) have no
    # generic Pallas equivalent; only the linear-model predict path is
    # kernelized.  For very wide D (>= ~32k f32 features, where even a
    # 128-row block blows the VMEM budget) a K-tiled accumulator variant
    # (grid=(N_tiles, K_tiles), f32 scratch, K axis "arbitrary") is needed.
    # If an xprof trace on v7x still shows exposed x DMA, add
    # pipeline_mode=pl.Buffered(3) on the x in_spec.

    # ---- explicit VMEM budget (covers v5e's 16 MiB scoped default) -------
    x_block_bytes = _round_up(tile_n, 8) * row_bytes
    w_block_bytes = 8 * d_pad * 4
    o_block_bytes = 8 * _round_up(tile_n, _LANE) * 4
    vmem_limit = int(max(2 * (x_block_bytes + w_block_bytes + o_block_bytes)
                         + (2 << 20), 32 << 20))

    cost = pl.CostEstimate(
        flops=2 * n * d,
        transcendentals=0,
        bytes_accessed=n * d * itemsize + d * 4 + out_total * 4,
    )

    out = pl.pallas_call(
        _linear_predict_kernel,
        out_shape=jax.ShapeDtypeStruct((1, out_total), jnp.float32),
        grid=(num_tiles,),
        in_specs=[
            pl.BlockSpec((tile_n, d), lambda i: (i, 0)),           # x row tile
            pl.BlockSpec((1, d), lambda i: (0, 0)),                # coef (resident)
            pl.BlockSpec(memory_space=pltpu.MemorySpace.SMEM),     # intercept
        ],
        out_specs=pl.BlockSpec((1, tile_n), lambda i: (0, i)),     # lane-dense
        compiler_params=pltpu.CompilerParams(
            dimension_semantics=("parallel",),
            vmem_limit_bytes=vmem_limit,
        ),
        cost_estimate=cost,
    )(x, w, b)

    # Mirrors torch.reshape(..., (-1, 1)).float() in the reference module.
    # NOTE: for exact agreement with sklearn's float64 predict, one could pass
    # precision=lax.Precision.HIGHEST to the dot; the f32 default already
    # matches to ~1e-5 on these shapes.
    return out[0, :n].reshape(-1, 1).astype(jnp.float32)


if __name__ == "__main__":
    key = jax.random.PRNGKey(0)
    kx, kw, kx2 = jax.random.split(key, 3)

    # Small, forward-consistent shapes: (n_samples, n_features).
    N, D = 8, 32
    x = jax.random.normal(kx, (N, D), dtype=jnp.float32)

    # Deterministic synthetic "fitted" linear model parameters.
    coef = jax.random.normal(kw, (D,), dtype=jnp.float32) * 0.1
    intercept = jnp.float32(0.5)

    # Case 1: tiny N -> single full-array block path.
    y = sklearn_model_forward(x, coef, intercept)
    jax.block_until_ready(y)
    y_ref = (x @ coef.reshape(D, 1) + intercept).reshape(-1, 1)
    assert y.shape == (N, 1) and y.dtype == jnp.float32
    assert jnp.allclose(y, y_ref, atol=1e-5, rtol=1e-5)

    # Case 2: multi-step grid with an unpadded ragged last block
    # (N2=300 -> two 256-row tiles, second tile has 44 valid rows).
    N2 = 300
    x2 = jax.random.normal(kx2, (N2, D), dtype=jnp.float32)
    y2 = sklearn_model_forward(x2, coef, intercept)
    jax.block_until_ready(y2)
    y2_ref = (x2 @ coef.reshape(D, 1) + intercept).reshape(-1, 1)
    assert y2.shape == (N2, 1) and y2.dtype == jnp.float32
    assert jnp.allclose(y2, y2_ref, atol=1e-5, rtol=1e-5)

    print("KERNEL_OK")
</pallas_src>

<mosaic_0001>
module attributes {stable_mosaic.version = 11 : i64} {
  func.func @_linear_predict_kernel(%arg0: i32, %arg1: memref<8x32xf32, #tpu.memory_space<vmem>>, %arg2: memref<1x32xf32, #tpu.memory_space<vmem>>, %arg3: memref<1x1xf32, #tpu.memory_space<smem>>, %arg4: memref<1x8xf32, #tpu.memory_space<vmem>>) attributes {dimension_semantics = [#tpu.dimension_semantics<parallel>], iteration_bounds = array<i64: 1>, scalar_prefetch = 0 : i64, scratch_operands = 0 : i64, tpu.core_type = #tpu.core_type<tc>, window_params = [{transform_indices = @transform_0, window_bounds = array<i64: 8, 32>}, {pipeline_mode = #tpu.pipeline_mode<synchronous>, transform_indices = @transform_1, window_bounds = array<i64: 1, 32>}, {transform_indices = @transform_2, window_bounds = array<i64: 1, 1>}, {transform_indices = @transform_3, window_bounds = array<i64: 1, 8>}]} {
    %c0 = arith.constant 0 : index
    %c0_0 = arith.constant 0 : index
    %0 = vector.load %arg1[%c0, %c0_0] : memref<8x32xf32, #tpu.memory_space<vmem>>, vector<8x32xf32>
    %c0_1 = arith.constant 0 : index
    %c0_2 = arith.constant 0 : index
    %1 = vector.load %arg2[%c0_1, %c0_2] : memref<1x32xf32, #tpu.memory_space<vmem>>, vector<1x32xf32>
    %cst = arith.constant dense<0.000000e+00> : vector<1x8xf32>
    %2 = tpu.matmul %1, %0, %cst {dimension_numbers = #tpu.dot_dimension_numbers<[1], [1], [0], [0], [0, 0, 1, 0], [], []>} : vector<1x32xf32>, vector<8x32xf32>, vector<1x8xf32> -> vector<1x8xf32>
    %c0_3 = arith.constant 0 : index
    %c0_4 = arith.constant 0 : index
    %3 = memref.load %arg3[%c0_3, %c0_4] : memref<1x1xf32, #tpu.memory_space<smem>>
    %4 = vector.broadcast %3 : f32 to vector<1x8xf32>
    %5 = arith.addf %2, %4 : vector<1x8xf32>
    %c0_5 = arith.constant 0 : index
    %c0_6 = arith.constant 0 : index
    %6 = vector.load %arg4[%c0_5, %c0_6] : memref<1x8xf32, #tpu.memory_space<vmem>>, vector<1x8xf32>
    tpu.vector_store %arg4[%c0_5, %c0_6], %5 {strides = array<i32>} : memref<1x8xf32, #tpu.memory_space<vmem>>, vector<1x8xf32>,
    return
  }
  func.func @transform_0(%arg0: i32) -> (i32, i32) {
    %c0_i32 = arith.constant 0 : i32
    %c0_i32_0 = arith.constant 0 : i32
    return %arg0, %c0_i32 : i32, i32
  }
  func.func @transform_1(%arg0: i32) -> (i32, i32) {
    %c0_i32 = arith.constant 0 : i32
    %c0_i32_0 = arith.constant 0 : i32
    %c0_i32_1 = arith.constant 0 : i32
    return %c0_i32, %c0_i32_0 : i32, i32
  }
  func.func @transform_2(%arg0: i32) -> (i32, i32) {
    %c0_i32 = arith.constant 0 : i32
    %c0_i32_0 = arith.constant 0 : i32
    %c0_i32_1 = arith.constant 0 : i32
    return %c0_i32, %c0_i32_0 : i32, i32
  }
  func.func @transform_3(%arg0: i32) -> (i32, i32) {
    %c0_i32 = arith.constant 0 : i32
    %c0_i32_0 = arith.constant 0 : i32
    return %c0_i32, %arg0 : i32, i32
  }
}

</mosaic_0001>

<bundles_post_ra>
// kernel: tpu_custom_call.1
= control target key start
LH: loop header
LB: loop body
LE: loop exit
PB: predicated region body
PF: predicated region fallthrough
CT: control target
= control target key end

     0   :  { %9 = vsyncpa [#allocation4], 0  ;;  %s219_s0 = inlined_call_operand.hbm [shape: f32[8,32], index: 0, kind: input, shape index: {}]   ;;  %s220_s1 = inlined_call_operand.vmem [shape: f32[1,32], index: 1, kind: input, shape index: {}]   ;;  %s221_s2 = inlined_call_operand.<no memory space> [shape: f32[1,1], index: 2, kind: input, shape index: {}]   ;;  %s222_s3 = inlined_call_operand.hbm [shape: f32[1,8], index: 3, kind: output, shape index: {}]  }
   0x1   :  { %10 = vsyncpa [#allocation5], 0  ;;  %s183_s12 = smov [#allocation3]  }
   0x2   :  { %s17_s13 = sshll.u32 %s183_s12, 4  ;;  %s18_s13 = int_to_ptr.vmem [resolvable:$true] %s17_s13 }
   0x3   :  { %s147_s14 = scalar_lea.vmem %s18_s13, 128  ;;  %p152_p1 = scmp.lt.s32.totalorder %s18_s13, %s18_s13 }
   0x4   :  { %p148_p0 = scmp.ne.s32.totalorder %s18_s13, %s147_s14  ;;  %p153_p2 = scmp.lt.s32.totalorder %s147_s14, %s147_s14 }
   0x6   :  { %p154_p3 = por %p153_p2, %p152_p1 }
   0x8   :  { %p155_p4 = pnand %p154_p3, %p148_p0 }
   0xa   :  { %158 = shalt.err (!%p155_p4)
}
   0xb   :  { %20 = dma.hbm_to_vmem [thread:$0]  %s219_s0, 128, %s18_s13, [#allocation4]  }
   0xc   :  { %179 = dma.done.wait [#allocation4], 128  }
   0xd   :  { %180 = vsyncadd [#allocation4], 4294967168  ;;  %v184_v0 = vmov 0.0   ;;  %vm185_vm0 = vmmov 0   ;;  %vm32_vm1 = vcmask 261120   ;;  %v28_v1 = vld [vmem:[#allocation3] sm:$0xff]  ;;  %v31_v3 = vstv %s221_s2 }
   0xe   :  { %130 = vmatprep.subr.mxu0 %v184_v0  ;;  %132 = vmatprep.mubr.msk.f32.mxu0 %vm185_vm0, %v184_v0  ;;  %v29_v2 = vld [vmem:[%s220_s1] sm:$0x1]  ;;  %s186_s21 = smov [#allocation6]   ;;  %vm109_vm2 = vcmask 57344  }
   0xf   :  { %131 = vmatpush3.xpose.msk.msra.mxu0 %vm32_vm1, %v28_v1  ;;  %s117_s0 = sshll.u32 %s186_s21, 4  ;;  %s118_s0 = int_to_ptr.vmem [resolvable:$true] %s117_s0 }
  0x10   :  { %s159_s22 = scalar_lea.vmem %s118_s0, 16  ;;  %s163_s23 = scalar_lea.vmem %s118_s0, 32 }
  0x11   :  { %p160_p5 = scmp.ne.s32.totalorder %s118_s0, %s159_s22  ;;  %p164_p6 = scmp.lt.s32.totalorder %s118_s0, %s118_s0 }
  0x12   :  { %133 = vmatmul.mubr.msk.f32.vlgmr.msra.gmra.mxu0 %vm32_vm1, %v29_v2  ;;  %p165_p7 = scmp.lt.s32.totalorder %s163_s23, %s159_s22 }
  0x14   :  { %p166_p8 = por %p165_p7, %p164_p6 }
  0x16   :  { %p167_p9 = pnand %p166_p8, %p160_p5 }
  0xd2   :  { %v105_v4 = vpop.f32.mrf.mxu0 }
  0xd3   :  { %v106_v5 = vadd.f32 %v105_v4, %v31_v3 }
  0xd4   :  { %v134_v6 = vpop.f32.mrf.mxu0 }
  0xd5   :  { %110 = vst.msk [vmem:[#allocation6] sm:$0x1] %vm109_vm2, %v106_v5 }
  0xd6   :  { %170 = shalt.err (!%p167_p9)
}
  0xd7   :  { %120 = dma.vmem_to_hbm [thread:$0]  %s118_s0, 16, %s222_s3, [#allocation5]  }
  0xd8   :  { %181 = dma.done.wait [#allocation5], 16  }
  0xd9   :  { %182 = vsyncadd [#allocation5], 4294967280 }
  0xda   :  { %124 = vsyncpa [#allocation4], 1 }
  0xdb   :  { %125 = vsyncpa [#allocation5], 1 }

</bundles_post_ra>
